<compile_context>
chip_gen: v7x
topology: tpu7x:2x2x1
jax: 0.10.0
libtpu: 0.0.40
codegen_flags: <defaults>
</compile_context>

<pallas_src>
import functools

import jax
import jax.numpy as jnp
from jax.experimental import pallas as pl
from jax.experimental.pallas import tpu as pltpu


def _round_up(n, m):
    return ((n + m - 1) // m) * m


def _round_down(n, m):
    return max(m, (n // m) * m)


def _fovea_kernel(*refs, use_smooth):
    """One row tile; the whole softmax (h*w) axis is resident in VMEM.

    refs = (smooth_ref, x_ref, o_ref) when use_smooth else (x_ref, o_ref).
    x_ref / o_ref: VMEM tiles of shape (tile_rows, k) with k == h*w (full axis,
    so row max/sum never see padding lanes).
    """
    if use_smooth:
        smooth_ref, x_ref, o_ref = refs
    else:
        x_ref, o_ref = refs

    x = x_ref[...].astype(jnp.float32)
    logits = x * smooth_ref[0] if use_smooth else x
    m = jnp.max(logits, axis=-1, keepdims=True)
    e = jnp.exp(logits - m)
    denom = jnp.sum(e, axis=-1, keepdims=True)
    # Fused epilogue: mask * x == (e / denom) * x, no full-tile `mask` temporary.
    # Exact reciprocal (cost hidden under the memory bound) for closer parity.
    o_ref[...] = ((e * x) * pl.reciprocal(denom)).astype(o_ref.dtype)


def _tpu_vmem_and_cores():
    """(VMEM capacity bytes, TensorCores per chip) with safe fallbacks."""
    vmem_cap = 128 * 1024 * 1024
    try:
        vmem_cap = int(pltpu.get_tpu_info().vmem_capacity_bytes)
    except Exception:  # pragma: no cover - info unavailable
        pass
    kind = ""
    try:
        kind = jax.devices()[0].device_kind.lower()
    except Exception:  # pragma: no cover
        pass
    # v7x: 64 MiB VMEM per TensorCore, 2 TensorCores per chip; v5e/v6e: 128 MiB, 1 TC.
    num_cores = 2 if ("v7" in kind or vmem_cap <= 64 * 1024 * 1024) else 1
    return vmem_cap, num_cores


def fovea(x, smooth_param=None, *, tile_rows=None):
    """Fovea forward.  x: [b, c, h, w].  smooth_param: None or f32 scalar array."""
    b, c, h, w = x.shape
    k = h * w
    rows = b * c
    x2 = x.reshape(rows, k)                     # contiguous view, no copy

    itemsize = jnp.dtype(x.dtype).itemsize
    sublane = {1: 32, 2: 16, 4: 8}.get(itemsize, 8)   # dtype-native sublane multiple

    vmem_cap, num_cores = _tpu_vmem_and_cores()

    # Explicit per-row VMEM accounting (per grid step):
    #   2x input + 2x output double buffers (input dtype)
    #   + ~4 live f32 full-tile temporaries in the body (x_f32, logits, e, e*x).
    per_row_io = 4 * k * itemsize
    per_row_tmp = 4 * k * 4
    per_row = per_row_io + per_row_tmp
    budget = int(vmem_cap * 0.6)

    if tile_rows is None:
        max_rows_budget = budget // per_row
        if max_rows_budget < sublane:
            # TODO(synk): very large h*w needs a K-blocked two-pass online-softmax
            # variant; even a single sublane-height row block no longer fits VMEM.
            max_rows_budget = sublane
        tile_rows = min(4096, _round_down(max_rows_budget, sublane))
        tile_rows = min(tile_rows, _round_up(rows, sublane))

        if num_cores >= 2 and rows > sublane:
            # v7x: the single 'parallel' grid axis is sharded across 2 TCs; make the
            # step count even and >= 2, but never shrink the input block below ~1 MiB
            # (per-step overhead would dominate the faster HBM otherwise).
            steps = -(-rows // tile_rows)
            if steps == 1 or steps % 2:
                target = max(2, steps + (steps % 2))
                cand = _round_up(-(-rows // target), sublane)
                if cand * k * itemsize >= (1 << 20):
                    tile_rows = cand
    else:
        tile_rows = _round_up(int(tile_rows), sublane)

    grid = (max(1, -(-rows // tile_rows)),)     # partial trailing block masked by Pallas

    # Scoped-VMEM request: actual usage + ~25% headroom (+Mosaic scratch), not the
    # whole chip — leaves VMEM for surrounding XLA fusions on v5e/v6e and keeps
    # real headroom under v7x's 64 MiB.
    vmem_needed = tile_rows * per_row
    vmem_limit = vmem_needed + vmem_needed // 4 + (4 << 20)
    vmem_limit = max(vmem_limit, 8 << 20)
    vmem_limit = min(vmem_limit, int(vmem_cap * 0.9))

    use_smooth = smooth_param is not None
    kernel = functools.partial(_fovea_kernel, use_smooth=use_smooth)

    x_spec = pl.BlockSpec((tile_rows, k), lambda i: (i, 0))   # full-K row tile
    in_specs = [x_spec]
    args = [x2]
    if use_smooth:
        smooth_val = jnp.asarray(smooth_param, jnp.float32).reshape((1,))
        in_specs = [pl.BlockSpec(memory_space=pltpu.SMEM)] + in_specs
        args = [smooth_val] + args

    out2 = pl.pallas_call(
        kernel,
        out_shape=jax.ShapeDtypeStruct((rows, k), x.dtype),
        grid_spec=pltpu.PrefetchScalarGridSpec(
            num_scalar_prefetch=0,
            grid=grid,
            in_specs=in_specs,
            out_specs=pl.BlockSpec((tile_rows, k), lambda i: (i, 0)),
        ),
        compiler_params=pltpu.CompilerParams(
            dimension_semantics=("parallel",),
            vmem_limit_bytes=int(vmem_limit),
        ),
    )(*args)

    return out2.reshape(b, c, h, w)


def fovea_ref(x, smooth_param=None):
    """Pure-JAX reference matching the PyTorch module."""
    b, c, h, w = x.shape
    x2 = x.reshape(b, c, h * w).astype(jnp.float32)
    scale = 1.0 if smooth_param is None else jnp.asarray(smooth_param, jnp.float32).reshape(())
    mask = jax.nn.softmax(x2 * scale, axis=-1)
    return (mask * x2).astype(x.dtype).reshape(b, c, h, w)


if __name__ == "__main__":
    key = jax.random.PRNGKey(0)

    # Case 1: h*w = 256 (lane-dense), smooth=False path (module default)
    b, c, h, w = 2, 4, 16, 16
    x = jax.random.normal(key, (b, c, h, w), dtype=jnp.float32)
    out_plain = jax.block_until_ready(fovea(x, smooth_param=None))
    ref_plain = fovea_ref(x, smooth_param=None)
    assert jnp.allclose(out_plain, ref_plain, atol=5e-3, rtol=5e-3)

    # Case 2: smooth=True path: nn.Parameter(torch.zeros(1) + 10.0)
    smooth = jnp.zeros((1,), jnp.float32) + 10.0
    out_smooth = jax.block_until_ready(fovea(x, smooth_param=smooth))
    ref_smooth = fovea_ref(x, smooth_param=smooth)
    assert jnp.allclose(out_smooth, ref_smooth, atol=5e-3, rtol=5e-3)

    # Case 3: h*w = 196 (not a multiple of 128) exercises the full-K (non-padded) path
    x14 = jax.random.normal(jax.random.fold_in(key, 1), (2, 4, 14, 14), dtype=jnp.float32)
    out_m = jax.block_until_ready(fovea(x14, smooth_param=smooth))
    ref_m = fovea_ref(x14, smooth_param=smooth)
    assert jnp.allclose(out_m, ref_m, atol=5e-3, rtol=5e-3)

    print("KERNEL_OK")
</pallas_src>

<mosaic_0001>
module attributes {stable_mosaic.version = 11 : i64} {
  func.func @_fovea_kernel(%arg0: i32, %arg1: memref<8x256xf32, #tpu.memory_space<vmem>>, %arg2: memref<8x256xf32, #tpu.memory_space<vmem>>) attributes {dimension_semantics = [#tpu.dimension_semantics<parallel>], iteration_bounds = array<i64: 1>, scalar_prefetch = 0 : i64, scratch_operands = 0 : i64, tpu.core_type = #tpu.core_type<tc>, window_params = [{transform_indices = @transform_0, window_bounds = array<i64: 8, 256>}, {transform_indices = @transform_1, window_bounds = array<i64: 8, 256>}]} {
    %c0 = arith.constant 0 : index
    %c0_0 = arith.constant 0 : index
    %0 = vector.load %arg1[%c0, %c0_0] : memref<8x256xf32, #tpu.memory_space<vmem>>, vector<8x256xf32>
    %cst = arith.constant dense<0xFF800000> : vector<8xf32>
    %1 = vector.multi_reduction <maximumf>, %0, %cst [1] : vector<8x256xf32> to vector<8xf32>
    %2 = vector.shape_cast %1 : vector<8xf32> to vector<8x1xf32>
    %3 = vector.broadcast %2 : vector<8x1xf32> to vector<8x256xf32>
    %4 = arith.subf %0, %3 : vector<8x256xf32>
    %5 = math.exp %4 : vector<8x256xf32>
    %cst_1 = arith.constant dense<0.000000e+00> : vector<8xf32>
    %6 = vector.multi_reduction <add>, %5, %cst_1 [1] : vector<8x256xf32> to vector<8xf32>
    %7 = vector.shape_cast %6 : vector<8xf32> to vector<8x1xf32>
    %8 = arith.mulf %5, %0 : vector<8x256xf32>
    %9 = tpu.reciprocal %7 : vector<8x1xf32> -> vector<8x1xf32>
    %10 = vector.broadcast %9 : vector<8x1xf32> to vector<8x256xf32>
    %11 = arith.mulf %8, %10 : vector<8x256xf32>
    %c0_2 = arith.constant 0 : index
    %c0_3 = arith.constant 0 : index
    %12 = vector.load %arg2[%c0_2, %c0_3] : memref<8x256xf32, #tpu.memory_space<vmem>>, vector<8x256xf32>
    tpu.vector_store %arg2[%c0_2, %c0_3], %11 {strides = array<i32>} : memref<8x256xf32, #tpu.memory_space<vmem>>, vector<8x256xf32>,
    return
  }
  func.func @transform_0(%arg0: i32) -> (i32, i32) {
    %c0_i32 = arith.constant 0 : i32
    %c0_i32_0 = arith.constant 0 : i32
    return %arg0, %c0_i32 : i32, i32
  }
  func.func @transform_1(%arg0: i32) -> (i32, i32) {
    %c0_i32 = arith.constant 0 : i32
    %c0_i32_0 = arith.constant 0 : i32
    return %arg0, %c0_i32 : i32, i32
  }
}

</mosaic_0001>

<bundles_post_ra>
// kernel: tpu_custom_call.1
= control target key start
LH: loop header
LB: loop body
LE: loop exit
PB: predicated region body
PF: predicated region fallthrough
CT: control target
= control target key end

     0   :  { %6 = vsyncpa [#allocation3], 0  ;;  %s149_s0 = inlined_call_operand.hbm [shape: f32[8,256], index: 0, kind: input, shape index: {}]   ;;  %s150_s1 = inlined_call_operand.hbm [shape: f32[8,256], index: 1, kind: output, shape index: {}]  }
   0x1   :  { %7 = vsyncpa [#allocation4], 0  ;;  %s113_s6 = smov [#allocation2]   ;;  %s65_s10 = scalar_lea.hbm %s149_s0, 256 }
   0x2   :  { %s14_s7 = sshll.u32 %s113_s6, 4  ;;  %p66_p0 = scmp.ne.s32.totalorder %s149_s0, %s65_s10  ;;  %s15_s7 = int_to_ptr.vmem [resolvable:$true] %s14_s7 }
   0x3   :  { %p69_p1 = scmp.lt.u32.totalorder %s65_s10, %s149_s0 }
   0x5   :  { %p71_p2 = pnand %p69_p1, %p66_p0 }
   0x7   :  { %74 = shalt.err (!%p71_p2)
}
   0x8   :  { %s75_s15 = scalar_lea.vmem %s15_s7, 256  ;;  %p80_p4 = scmp.lt.s32.totalorder %s15_s7, %s15_s7 }
   0x9   :  { %p76_p3 = scmp.ne.s32.totalorder %s15_s7, %s75_s15  ;;  %p81_p5 = scmp.lt.s32.totalorder %s75_s15, %s75_s15 }
   0xb   :  { %p82_p6 = por %p81_p5, %p80_p4 }
   0xd   :  { %p83_p7 = pnand %p82_p6, %p76_p3 }
   0xf   :  { %86 = shalt.err (!%p83_p7)
}
  0x10   :  { %17 = dma.hbm_to_vmem [thread:$0]  %s149_s0, 256, %s15_s7, [#allocation3]  }
  0x11   :  { %109 = dma.done.wait [#allocation3], 256  }
  0x12   :  { %110 = vsyncadd [#allocation3], 4294967040  ;;  %v21_v0 = vld [vmem:[#allocation2] sm:$0xff]  ;;  %v22_v1 = vld [vmem:[#allocation2 + $0x8] sm:$0xff]  ;;  %s114_s0 = smov [#allocation5]  }
  0x13   :  { %v23_v2 = vmax.f32 %v21_v0, %v22_v1  ;;  %s48_s18 = sshll.u32 %s114_s0, 4  ;;  %s49_s18 = int_to_ptr.vmem [resolvable:$true] %s48_s18 }
  0x14   :  { %s87_s19 = scalar_lea.vmem %s49_s18, 256  ;;  %p92_p9 = scmp.lt.s32.totalorder %s49_s18, %s49_s18 }
  0x15   :  { %24 = vmax.xlane.f32.xlu0 %v23_v2  ;;  %p88_p8 = scmp.ne.s32.totalorder %s49_s18, %s87_s19  ;;  %p93_p10 = scmp.lt.s32.totalorder %s87_s19, %s87_s19 }
  0x17   :  { %p94_p11 = por %p93_p10, %p92_p9 }
  0x19   :  { %p95_p12 = pnand %p94_p11, %p88_p8 }
  0xa2   :  { %v25_v3 = vpop.xlane.xlu0 %24 }
  0xa3   :  { %v26_v4 = vsub.f32 %v21_v0, %v25_v3  ;;  %v27_v5 = vsub.f32 %v22_v1, %v25_v3 }
  0xa5   :  { %v28_v6 = vmul.f32 1.442695, %v26_v4  ;;  %v30_v7 = vmul.f32 1.442695, %v27_v5 }
  0xa7   :  { %59 = vpow2.f32 %v28_v6 }
  0xa8   :  { %61 = vpow2.f32 %v30_v7 }
  0xb1   :  { %v60_v8 = vpop.eup %59 }
  0xb2   :  { %v62_v9 = vpop.eup %61  ;;  %v35_v12 = vmul.f32 %v60_v8, %v21_v0 }
  0xb3   :  { %v32_v10 = vadd.f32 %v62_v9, %v60_v8  ;;  %v36_v13 = vmul.f32 %v62_v9, %v22_v1 }
  0xb5   :  { %33 = vadd.xlane.f32.xlu0 %v32_v10 }
 0x142   :  { %v34_v11 = vpop.xlane.xlu0 %33 }
 0x143   :  { %63 = vrcp.f32 %v34_v11 }
 0x14d   :  { %v64_v14 = vpop.eup %63 }
 0x14e   :  { %v38_v15 = vmul.f32 %v64_v14, %v35_v12  ;;  %v39_v16 = vmul.f32 %v64_v14, %v36_v13 }
 0x150   :  { %40 = vst [vmem:[#allocation5] sm:$0xff] %v38_v15  ;;  %41 = vst [vmem:[#allocation5 + $0x8] sm:$0xff] %v39_v16 }
 0x151   :  { %98 = shalt.err (!%p95_p12)
}
 0x152   :  { %s99_s22 = scalar_lea.hbm %s150_s1, 256 }
 0x153   :  { %p100_p13 = scmp.ne.s32.totalorder %s150_s1, %s99_s22  ;;  %p103_p0 = scmp.lt.u32.totalorder %s99_s22, %s150_s1 }
 0x155   :  { %p105_p1 = pnand %p103_p0, %p100_p13 }
 0x157   :  { %108 = shalt.err (!%p105_p1)
}
 0x158   :  { %51 = dma.vmem_to_hbm [thread:$0]  %s49_s18, 256, %s150_s1, [#allocation4]  }
 0x159   :  { %111 = dma.done.wait [#allocation4], 256  }
 0x15a   :  { %112 = vsyncadd [#allocation4], 4294967040 }
 0x15b   :  { %55 = vsyncpa [#allocation3], 1 }
 0x15c   :  { %56 = vsyncpa [#allocation4], 1 }

</bundles_post_ra>
